<compile_context>
chip_gen: v7x
topology: tpu7x:2x2x1
jax: 0.10.0
libtpu: 0.0.40
codegen_flags: <defaults>
</compile_context>

<pallas_src>
import functools

import jax
import jax.numpy as jnp
from jax import lax
from jax.experimental import pallas as pl
from jax.experimental.pallas import tpu as pltpu


def _dequant_linear_kernel(tbl_lo_ref, tbl_hi_ref, x_ref, w_ref, absmax_ref, bias_ref,
                           o_ref, w_deq_ref, acc_ref, *, block_k, x_resident):
    """One (tm, tn) output tile, accumulated over the K grid axis.

    tbl_lo_ref : (tk, 128) f32  VMEM  codebook entries 0..127 (pre-broadcast, resident)
    tbl_hi_ref : (tk, 128) f32  VMEM  codebook entries 128..255
    x_ref      : (tm, K) or (tm, tk) bf16 VMEM activations
    w_ref      : (tk, tn) u8    VMEM  quantized weight tile ((K, N) layout in HBM)
    absmax_ref : (1, tn)  f32   VMEM  per-output-row scale
    bias_ref   : (1, tn)  f32   VMEM  bias
    o_ref      : (tm, tn)       VMEM  output tile
    w_deq_ref  : (tk, tn) bf16  VMEM  scratch: dequantized weight tile
    acc_ref    : (tm, tn) f32   VMEM  scratch: accumulator over K
    """
    k = pl.program_id(2)
    nk = pl.num_programs(2)
    tk, tn = w_ref.shape

    # --- blockwise dequantization: per 128-lane chunk, straight into VMEM scratch ---
    for c in range(tn // 128):
        sl = slice(c * 128, (c + 1) * 128)
        ic = w_ref[:, sl].astype(jnp.int32)            # widen per chunk only
        low7 = ic & 0x7F                               # keeps gather indices in [0, 128)
        v_lo = jnp.take_along_axis(tbl_lo_ref[...], low7, axis=1,
                                   mode="promise_in_bounds")
        v_hi = jnp.take_along_axis(tbl_hi_ref[...], low7, axis=1,
                                   mode="promise_in_bounds")
        w_deq_ref[:, sl] = jnp.where(ic >= 128, v_hi, v_lo).astype(jnp.bfloat16)

    # --- MXU hot path: bf16 x bf16 -> f32 ---
    if x_resident:
        start = pl.multiple_of(k * block_k, 128)
        xk = x_ref[:, pl.ds(start, block_k)]           # lane-aligned slice of resident x
    else:
        xk = x_ref[...]
    partial = jnp.dot(xk, w_deq_ref[...], preferred_element_type=jnp.float32)

    @pl.when(k == 0)
    def _():
        acc_ref[...] = partial

    @pl.when(k > 0)
    def _():
        acc_ref[...] += partial

    # absmax is constant along K (one scale per output row): apply scale + bias +
    # output cast once, lane-dense, at the finalize step.
    @pl.when(k == nk - 1)
    def _():
        o_ref[...] = (acc_ref[...] * absmax_ref[...] + bias_ref[...]).astype(o_ref.dtype)


def _vmem_limit_bytes():
    """~3/4 of physical VMEM: 96 MiB-class on v5e/v6e, 48 MiB-class on v7x."""
    cap = 64 * 1024 * 1024
    try:
        cap = int(pltpu.get_tpu_info().vmem_capacity_bytes)
    except Exception:
        pass
    return max(32 * 1024 * 1024, (cap * 3) // 4)


def frozen_bnb_linear(x, weight_q_kn, absmax, code, bias=None, *,
                      tm=512, tn=256, tk=1024, out_dtype=jnp.float32):
    """Forward pass of FrozenBNBLinear.

    x           : (B, S, in_features)   float
    weight_q_kn : (in, out)             uint8 quantized codes, PRE-TRANSPOSED at load time
    absmax      : (out,)                f32   (blocksize == in_features -> one scale / row)
    code        : (256,)                f32 codebook
    bias        : (out,) or None        f32
    returns     : (B, S, out)           out_dtype (f32 default; bf16 halves writeback bytes)
    """
    B, S, K = x.shape
    K2, N = weight_q_kn.shape
    assert K == K2, "in_features mismatch (weight must be pre-transposed to (in, out))"
    assert code.shape[0] == 256
    M = B * S

    vmem_limit = _vmem_limit_bytes()

    tm = min(tm, M)
    tn = min(tn, N)
    tk = min(tk, K)

    # Keep the resident (tm, K) bf16 activation block (double-buffered) within a fraction
    # of VMEM: shrink tm first (keeps x resident across j/k), stream x as a last resort.
    x_budget = vmem_limit // 2
    while tm > 256 and 2 * (tm * K * 2) > x_budget:
        tm //= 2
    x_resident = 2 * (tm * K * 2) <= x_budget

    # v7x megacore: make sure the parallel grid extent can feed both TensorCores.
    while (M // tm) * (N // tn) < 2 and tn > 128 and N % (tn // 2) == 0:
        tn //= 2

    assert M % tm == 0 and N % tn == 0 and K % tk == 0, "shapes must tile evenly"
    assert tm % 8 == 0 and tn % 128 == 0 and tk % 128 == 0

    if bias is None:
        bias = jnp.zeros((N,), jnp.float32)

    # TODO(synk): support the generic bitsandbytes blocksize-4096 flattened absmax layout
    # (needs per-K-block scales inside the K loop instead of the hoisted per-row scale).
    x2 = x.reshape(M, K).astype(jnp.bfloat16)              # halve activation DMA bytes
    absmax2 = absmax.reshape(1, N).astype(jnp.float32)
    bias2 = bias.reshape(1, N).astype(jnp.float32)
    code_f32 = code.astype(jnp.float32)
    # lo / hi halves of the 256-entry codebook, pre-broadcast over the tk sublanes the
    # in-kernel lane-gather needs; fetched once and kept VMEM-resident.
    tbl_lo = jnp.broadcast_to(code_f32[:128].reshape(1, 128), (tk, 128))
    tbl_hi = jnp.broadcast_to(code_f32[128:].reshape(1, 128), (tk, 128))

    if x_resident:
        x_spec = pl.BlockSpec((tm, K), lambda i, j, k: (i, 0))    # resident across (j, k)
    else:
        x_spec = pl.BlockSpec((tm, tk), lambda i, j, k: (i, k))   # streamed per K step

    grid = (M // tm, N // tn, K // tk)
    kernel = functools.partial(_dequant_linear_kernel, block_k=tk, x_resident=x_resident)

    out = pl.pallas_call(
        kernel,
        out_shape=jax.ShapeDtypeStruct((M, N), out_dtype),
        grid_spec=pltpu.PrefetchScalarGridSpec(
            num_scalar_prefetch=0,
            grid=grid,
            in_specs=[
                pl.BlockSpec((tk, 128), lambda i, j, k: (0, 0)),   # codebook lo (fetched once)
                pl.BlockSpec((tk, 128), lambda i, j, k: (0, 0)),   # codebook hi (fetched once)
                x_spec,                                            # activations
                pl.BlockSpec((tk, tn), lambda i, j, k: (k, j)),    # weight u8, (K, N) layout
                pl.BlockSpec((1, tn), lambda i, j, k: (0, j)),     # absmax (lane-dense)
                pl.BlockSpec((1, tn), lambda i, j, k: (0, j)),     # bias   (lane-dense)
            ],
            out_specs=pl.BlockSpec((tm, tn), lambda i, j, k: (i, j)),
            scratch_shapes=[
                pltpu.VMEM((tk, tn), jnp.bfloat16),   # dequantized weight tile
                pltpu.VMEM((tm, tn), jnp.float32),    # f32 accumulator
            ],
        ),
        compiler_params=pltpu.CompilerParams(
            dimension_semantics=("parallel", "parallel", "arbitrary"),
            vmem_limit_bytes=vmem_limit,
        ),
    )(tbl_lo, tbl_hi, x2, weight_q_kn, absmax2, bias2)

    return out.reshape(B, S, N)


if __name__ == "__main__":
    key = jax.random.PRNGKey(0)
    k_x, k_w, k_a, k_b = jax.random.split(key, 4)

    B, S, IN, OUT = 2, 8, 256, 128

    # Deterministic synthetic inputs / quantization state (no checkpoint loading):
    x = jax.random.normal(k_x, (B, S, IN), dtype=jnp.float32)
    weight_q = jax.random.randint(k_w, (OUT, IN), 0, 256, dtype=jnp.int32).astype(jnp.uint8)
    absmax = jax.random.uniform(k_a, (OUT,), dtype=jnp.float32, minval=0.5, maxval=1.5)
    code = jnp.tanh(jnp.linspace(-3.0, 3.0, 256, dtype=jnp.float32))  # nonlinear codebook
    bias = 0.5 * jax.random.normal(k_b, (OUT,), dtype=jnp.float32)

    # One-time, load-time prep (what a frozen module would store): (in, out) u8 layout.
    # This transpose is NOT on the per-forward-call path.
    weight_q_kn = jnp.asarray(weight_q).T

    out = frozen_bnb_linear(x, weight_q_kn, absmax, code, bias)
    out = jax.block_until_ready(out)

    # Pure-JAX reference: dequantize_blockwise + F.linear (full f32).
    w_deq = code[weight_q.astype(jnp.int32)] * absmax[:, None]
    ref = jnp.einsum("bsk,nk->bsn", x, w_deq,
                     precision=lax.Precision.HIGHEST) + bias

    assert out.shape == (B, S, OUT)
    # Kernel matmuls in bf16 (f32 accumulation); tolerance sized for sqrt(K) * bf16 rounding.
    max_err = float(jnp.max(jnp.abs(out - ref)))
    rel_err = max_err / (float(jnp.max(jnp.abs(ref))) + 1e-6)
    if rel_err < 2e-2:
        print("KERNEL_OK")
    else:
        print(f"MISMATCH max_abs_err={max_err} rel_err={rel_err}")
</pallas_src>

<mosaic_0001>
module attributes {stable_mosaic.version = 11 : i64} {
  func.func @_dequant_linear_kernel(%arg0: i32, %arg1: i32, %arg2: i32, %arg3: memref<256x128xf32, #tpu.memory_space<vmem>>, %arg4: memref<256x128xf32, #tpu.memory_space<vmem>>, %arg5: memref<16x256xbf16, #tpu.memory_space<vmem>>, %arg6: memref<256x128xi8, #tpu.memory_space<vmem>>, %arg7: memref<1x128xf32, #tpu.memory_space<vmem>>, %arg8: memref<1x128xf32, #tpu.memory_space<vmem>>, %arg9: memref<16x128xf32, #tpu.memory_space<vmem>>, %arg10: memref<256x128xbf16, #tpu.memory_space<vmem>>, %arg11: memref<16x128xf32, #tpu.memory_space<vmem>>) attributes {dimension_semantics = [#tpu.dimension_semantics<parallel>, #tpu.dimension_semantics<parallel>, #tpu.dimension_semantics<arbitrary>], iteration_bounds = array<i64: 1, 1, 1>, scalar_prefetch = 0 : i64, scratch_operands = 2 : i64, tpu.core_type = #tpu.core_type<tc>, window_params = [{pipeline_mode = #tpu.pipeline_mode<synchronous>, transform_indices = @transform_0, window_bounds = array<i64: 256, 128>}, {pipeline_mode = #tpu.pipeline_mode<synchronous>, transform_indices = @transform_1, window_bounds = array<i64: 256, 128>}, {transform_indices = @transform_2, window_bounds = array<i64: 16, 256>}, {transform_indices = @transform_3, window_bounds = array<i64: 256, 128>}, {transform_indices = @transform_4, window_bounds = array<i64: 1, 128>}, {transform_indices = @transform_5, window_bounds = array<i64: 1, 128>}, {transform_indices = @transform_6, window_bounds = array<i64: 16, 128>}]} {
    %c0 = arith.constant 0 : index
    %c0_0 = arith.constant 0 : index
    %0 = vector.load %arg6[%c0, %c0_0] : memref<256x128xi8, #tpu.memory_space<vmem>>, vector<256x128xi8>
    %1 = arith.extui %0 : vector<256x128xi8> to vector<256x128xi32>
    %c127_i32 = arith.constant 127 : i32
    %2 = vector.broadcast %c127_i32 : i32 to vector<256x128xi32>
    %3 = arith.andi %1, %2 : vector<256x128xi32>
    %c0_1 = arith.constant 0 : index
    %c0_2 = arith.constant 0 : index
    %4 = vector.load %arg3[%c0_1, %c0_2] : memref<256x128xf32, #tpu.memory_space<vmem>>, vector<256x128xf32>
    %5 = vector.shape_cast %3 : vector<256x128xi32> to vector<256x128x1xi32>
    %6 = vector.shape_cast %5 : vector<256x128x1xi32> to vector<256x128xi32>
    %7 = tpu.dynamic_gather %4[%6] in [1] : vector<256x128xf32>, vector<256x128xi32> -> vector<256x128xf32>
    %c0_3 = arith.constant 0 : index
    %c0_4 = arith.constant 0 : index
    %8 = vector.load %arg4[%c0_3, %c0_4] : memref<256x128xf32, #tpu.memory_space<vmem>>, vector<256x128xf32>
    %9 = vector.shape_cast %3 : vector<256x128xi32> to vector<256x128x1xi32>
    %10 = vector.shape_cast %9 : vector<256x128x1xi32> to vector<256x128xi32>
    %11 = tpu.dynamic_gather %8[%10] in [1] : vector<256x128xf32>, vector<256x128xi32> -> vector<256x128xf32>
    %c128_i32 = arith.constant 128 : i32
    %12 = vector.broadcast %c128_i32 : i32 to vector<256x128xi32>
    %13 = arith.cmpi sge, %1, %12 : vector<256x128xi32>
    %14 = arith.select %13, %11, %7 : vector<256x128xi1>, vector<256x128xf32>
    %15 = arith.truncf %14 : vector<256x128xf32> to vector<256x128xbf16>
    %c0_5 = arith.constant 0 : index
    %c0_6 = arith.constant 0 : index
    %16 = vector.load %arg10[%c0_5, %c0_6] : memref<256x128xbf16, #tpu.memory_space<vmem>>, vector<256x128xbf16>
    tpu.vector_store %arg10[%c0_5, %c0_6], %15 {strides = array<i32>} : memref<256x128xbf16, #tpu.memory_space<vmem>>, vector<256x128xbf16>,
    %c256_i32 = arith.constant 256 : i32
    %17 = arith.muli %arg2, %c256_i32 : i32
    %18 = tpu.assume_multiple %17, 128 : i32
    %c0_7 = arith.constant 0 : index
    %19 = arith.index_cast %18 : i32 to index
    %20 = vector.load %arg5[%c0_7, %19] : memref<16x256xbf16, #tpu.memory_space<vmem>>, vector<16x256xbf16>
    %c0_8 = arith.constant 0 : index
    %c0_9 = arith.constant 0 : index
    %21 = vector.load %arg10[%c0_8, %c0_9] : memref<256x128xbf16, #tpu.memory_space<vmem>>, vector<256x128xbf16>
    %cst = arith.constant dense<0.000000e+00> : vector<16x128xf32>
    %22 = tpu.matmul %20, %21, %cst {dimension_numbers = #tpu.dot_dimension_numbers<[1], [0], [0], [1], [0, 0, 1, 1], [], []>} : vector<16x256xbf16>, vector<256x128xbf16>, vector<16x128xf32> -> vector<16x128xf32>
    %c0_i32 = arith.constant 0 : i32
    %23 = arith.cmpi eq, %arg2, %c0_i32 : i32
    %24 = arith.extui %23 : i1 to i32
    %c0_i32_10 = arith.constant 0 : i32
    %25 = arith.cmpi ne, %24, %c0_i32_10 : i32
    scf.if %25 {
      %c0_15 = arith.constant 0 : index
      %c0_16 = arith.constant 0 : index
      %32 = vector.load %arg11[%c0_15, %c0_16] : memref<16x128xf32, #tpu.memory_space<vmem>>, vector<16x128xf32>
      tpu.vector_store %arg11[%c0_15, %c0_16], %22 {strides = array<i32>} : memref<16x128xf32, #tpu.memory_space<vmem>>, vector<16x128xf32>,
    } else {
    }
    %c0_i32_11 = arith.constant 0 : i32
    %26 = arith.cmpi sgt, %arg2, %c0_i32_11 : i32
    %27 = arith.extui %26 : i1 to i32
    %c0_i32_12 = arith.constant 0 : i32
    %28 = arith.cmpi ne, %27, %c0_i32_12 : i32
    scf.if %28 {
      %c0_15 = arith.constant 0 : index
      %c0_16 = arith.constant 0 : index
      %32 = vector.load %arg11[%c0_15, %c0_16] : memref<16x128xf32, #tpu.memory_space<vmem>>, vector<16x128xf32>
      %33 = arith.addf %32, %22 : vector<16x128xf32>
      %c0_17 = arith.constant 0 : index
      %c0_18 = arith.constant 0 : index
      %34 = vector.load %arg11[%c0_17, %c0_18] : memref<16x128xf32, #tpu.memory_space<vmem>>, vector<16x128xf32>
      tpu.vector_store %arg11[%c0_17, %c0_18], %33 {strides = array<i32>} : memref<16x128xf32, #tpu.memory_space<vmem>>, vector<16x128xf32>,
    } else {
    }
    %c0_i32_13 = arith.constant 0 : i32
    %29 = arith.cmpi eq, %arg2, %c0_i32_13 : i32
    %30 = arith.extui %29 : i1 to i32
    %c0_i32_14 = arith.constant 0 : i32
    %31 = arith.cmpi ne, %30, %c0_i32_14 : i32
    scf.if %31 {
      %c0_15 = arith.constant 0 : index
      %c0_16 = arith.constant 0 : index
      %32 = vector.load %arg11[%c0_15, %c0_16] : memref<16x128xf32, #tpu.memory_space<vmem>>, vector<16x128xf32>
      %c0_17 = arith.constant 0 : index
      %c0_18 = arith.constant 0 : index
      %33 = vector.load %arg7[%c0_17, %c0_18] : memref<1x128xf32, #tpu.memory_space<vmem>>, vector<1x128xf32>
      %34 = vector.broadcast %33 : vector<1x128xf32> to vector<16x128xf32>
      %35 = arith.mulf %32, %34 : vector<16x128xf32>
      %c0_19 = arith.constant 0 : index
      %c0_20 = arith.constant 0 : index
      %36 = vector.load %arg8[%c0_19, %c0_20] : memref<1x128xf32, #tpu.memory_space<vmem>>, vector<1x128xf32>
      %37 = vector.broadcast %36 : vector<1x128xf32> to vector<16x128xf32>
      %38 = arith.addf %35, %37 : vector<16x128xf32>
      %c0_21 = arith.constant 0 : index
      %c0_22 = arith.constant 0 : index
      %39 = vector.load %arg9[%c0_21, %c0_22] : memref<16x128xf32, #tpu.memory_space<vmem>>, vector<16x128xf32>
      tpu.vector_store %arg9[%c0_21, %c0_22], %38 {strides = array<i32>} : memref<16x128xf32, #tpu.memory_space<vmem>>, vector<16x128xf32>,
    } else {
    }
    return
  }
  func.func @transform_0(%arg0: i32, %arg1: i32, %arg2: i32) -> (i32, i32) {
    %c0_i32 = arith.constant 0 : i32
    %c0_i32_0 = arith.constant 0 : i32
    %c0_i32_1 = arith.constant 0 : i32
    return %c0_i32, %c0_i32_0 : i32, i32
  }
  func.func @transform_1(%arg0: i32, %arg1: i32, %arg2: i32) -> (i32, i32) {
    %c0_i32 = arith.constant 0 : i32
    %c0_i32_0 = arith.constant 0 : i32
    %c0_i32_1 = arith.constant 0 : i32
    return %c0_i32, %c0_i32_0 : i32, i32
  }
  func.func @transform_2(%arg0: i32, %arg1: i32, %arg2: i32) -> (i32, i32) {
    %c0_i32 = arith.constant 0 : i32
    %c0_i32_0 = arith.constant 0 : i32
    return %arg0, %c0_i32 : i32, i32
  }
  func.func @transform_3(%arg0: i32, %arg1: i32, %arg2: i32) -> (i32, i32) {
    %c0_i32 = arith.constant 0 : i32
    return %arg2, %arg1 : i32, i32
  }
  func.func @transform_4(%arg0: i32, %arg1: i32, %arg2: i32) -> (i32, i32) {
    %c0_i32 = arith.constant 0 : i32
    %c0_i32_0 = arith.constant 0 : i32
    return %c0_i32, %arg1 : i32, i32
  }
  func.func @transform_5(%arg0: i32, %arg1: i32, %arg2: i32) -> (i32, i32) {
    %c0_i32 = arith.constant 0 : i32
    %c0_i32_0 = arith.constant 0 : i32
    return %c0_i32, %arg1 : i32, i32
  }
  func.func @transform_6(%arg0: i32, %arg1: i32, %arg2: i32) -> (i32, i32) {
    %c0_i32 = arith.constant 0 : i32
    return %arg0, %arg1 : i32, i32
  }
}

</mosaic_0001>

<bundles_post_ra>
// kernel: tpu_custom_call.1
= control target key start
LH: loop header
LB: loop body
LE: loop exit
PB: predicated region body
PF: predicated region fallthrough
CT: control target
= control target key end

     0   :  { %11 = vsyncpa [#allocation5], 0  ;;  %s1327_s0 = inlined_call_operand.hbm [shape: f32[256,128], index: 0, kind: input, shape index: {}]   ;;  %s1328_s1 = inlined_call_operand.hbm [shape: f32[256,128], index: 1, kind: input, shape index: {}]   ;;  %s1329_s2 = inlined_call_operand.hbm [shape: bf16[16,256], index: 2, kind: input, shape index: {}]   ;;  %s1330_s3 = inlined_call_operand.hbm [shape: u8[256,128], index: 3, kind: input, shape index: {}]   ;;  %s1331_s4 = inlined_call_operand.vmem [shape: f32[1,128], index: 4, kind: input, shape index: {}]   ;;  %s1332_s5 = inlined_call_operand.vmem [shape: f32[1,128], index: 5, kind: input, shape index: {}]   ;;  %s1333_s6 = inlined_call_operand.hbm [shape: f32[16,128], index: 6, kind: output, shape index: {}]  }
   0x1   :  { %12 = vsyncpa [#allocation8], 0 }
   0x2   :  { %13 = vsyncpa [#allocation11], 0 }
   0x3   :  { %14 = vsyncpa [#allocation6], 0  ;;  %s1018_s21 = smov [#allocation7]   ;;  %s1019_s23 = smov [#allocation4]  }
   0x4   :  { %s32_s22 = sshll.u32 %s1018_s21, 4  ;;  %s20_s24 = sshll.u32 %s1019_s23, 4  ;;  %s33_s22 = int_to_ptr.vmem [resolvable:$true] %s32_s22  ;;  %s1060_s24 = int_to_ptr.vmem [resolvable:$true] %s20_s24 }
   0x5   :  { %s900_s27 = scalar_lea.hbm %s1328_s1, 4096 }
   0x6   :  { %p901_p0 = scmp.ne.s32.totalorder %s1328_s1, %s900_s27  ;;  %p904_p1 = scmp.lt.u32.totalorder %s900_s27, %s1328_s1 }
   0x8   :  { %p906_p2 = pnand %p904_p1, %p901_p0 }
   0xa   :  { %909 = shalt.err (!%p906_p2)
}
   0xb   :  { %s910_s8 = scalar_lea.vmem %s33_s22, 4096  ;;  %p915_p4 = scmp.lt.s32.totalorder %s33_s22, %s33_s22 }
   0xc   :  { %p911_p3 = scmp.ne.s32.totalorder %s33_s22, %s910_s8  ;;  %p916_p5 = scmp.lt.s32.totalorder %s910_s8, %s910_s8 }
   0xe   :  { %p917_p6 = por %p916_p5, %p915_p4 }
  0x10   :  { %p918_p7 = pnand %p917_p6, %p911_p3 }
  0x12   :  { %921 = shalt.err (!%p918_p7)
}
  0x13   :  { %s1020_s9 = smov 128   ;;  %s1021_s10 = smov 8  }
  0x14   :  { %38 = dma.hbm_to_vmem [thread:$0]  %s1328_s1, 4096, %s33_s22, [#allocation8], %s1020_s9, %s1020_s9, %s1021_s10  }
  0x15   :  { %s922_s15 = scalar_lea.hbm %s1327_s0, 4096 }
  0x16   :  { %p923_p8 = scmp.ne.s32.totalorder %s1327_s0, %s922_s15  ;;  %p926_p9 = scmp.lt.u32.totalorder %s922_s15, %s1327_s0 }
  0x18   :  { %p928_p10 = pnand %p926_p9, %p923_p8 }
  0x1a   :  { %931 = shalt.err (!%p928_p10)
}
  0x1b   :  { %s932_s20 = scalar_lea.vmem %s1060_s24, 4096  ;;  %p937_p12 = scmp.lt.s32.totalorder %s1060_s24, %s1060_s24 }
  0x1c   :  { %p933_p11 = scmp.ne.s32.totalorder %s1060_s24, %s932_s20  ;;  %p938_p13 = scmp.lt.s32.totalorder %s932_s20, %s932_s20 }
  0x1e   :  { %p939_p0 = por %p938_p13, %p937_p12 }
  0x20   :  { %p940_p1 = pnand %p939_p0, %p933_p11 }
  0x22   :  { %943 = shalt.err (!%p940_p1)
}
  0x23   :  { %26 = dma.hbm_to_vmem [thread:$0]  %s1327_s0, 4096, %s1060_s24, [#allocation5], %s1020_s9, %s1020_s9, %s1021_s10  }
  0x24   :  { %s1022_s22 = smov [#allocation9]   ;;  %s1023_s25 = smov [#allocation10]  }
  0x25   :  { %s44_s23 = sshll.u32 %s1022_s22, 4  ;;  %s56_s26 = sshll.u32 %s1023_s25, 4  ;;  %s45_s23 = int_to_ptr.vmem [resolvable:$true] %s44_s23  ;;  %s1097_s26 = int_to_ptr.vmem [resolvable:$true] %s56_s26 }
  0x26   :  { %s944_s29 = scalar_lea.hbm %s1329_s2, 256 }
  0x27   :  { %p945_p2 = scmp.ne.s32.totalorder %s1329_s2, %s944_s29  ;;  %p948_p3 = scmp.lt.u32.totalorder %s944_s29, %s1329_s2 }
  0x29   :  { %p950_p4 = pnand %p948_p3, %p945_p2 }
  0x2b   :  { %953 = shalt.err (!%p950_p4)
}
  0x2c   :  { %s954_s0 = scalar_lea.vmem %s45_s23, 256  ;;  %p959_p6 = scmp.lt.s32.totalorder %s45_s23, %s45_s23 }
  0x2d   :  { %p955_p5 = scmp.ne.s32.totalorder %s45_s23, %s954_s0  ;;  %p960_p7 = scmp.lt.s32.totalorder %s954_s0, %s954_s0 }
  0x2f   :  { %p961_p8 = por %p960_p7, %p959_p6 }
  0x31   :  { %p962_p9 = pnand %p961_p8, %p955_p5 }
  0x33   :  { %965 = shalt.err (!%p962_p9)
}
  0x34   :  { %50 = dma.hbm_to_vmem [thread:$0]  %s1329_s2, 256, %s45_s23, [#allocation8], %s1020_s9, %s1020_s9, %s1021_s10  }
  0x35   :  { %s966_s15 = scalar_lea.hbm %s1330_s3, 1024 }
  0x36   :  { %p967_p10 = scmp.ne.s32.totalorder %s1330_s3, %s966_s15  ;;  %p970_p11 = scmp.lt.u32.totalorder %s966_s15, %s1330_s3 }
  0x38   :  { %p972_p12 = pnand %p970_p11, %p967_p10 }
  0x3a   :  { %975 = shalt.err (!%p972_p12)
}
  0x3b   :  { %s976_s20 = scalar_lea.vmem %s1097_s26, 1024  ;;  %p981_p0 = scmp.lt.s32.totalorder %s1097_s26, %s1097_s26 }
  0x3c   :  { %p977_p13 = scmp.ne.s32.totalorder %s1097_s26, %s976_s20  ;;  %p982_p1 = scmp.lt.s32.totalorder %s976_s20, %s976_s20 }
  0x3e   :  { %p983_p2 = por %p982_p1, %p981_p0 }
  0x40   :  { %p984_p3 = pnand %p983_p2, %p977_p13 }
  0x42   :  { %987 = shalt.err (!%p984_p3)
}
  0x43   :  { %62 = dma.hbm_to_vmem [thread:$0]  %s1330_s3, 1024, %s1097_s26, [#allocation11], %s1020_s9, %s1020_s9, %s1021_s10  }
  0x44   :  { %1010 = dma.done.wait [#allocation5], 4096  }
  0x45   :  { %1011 = vsyncadd [#allocation5], 4294963200 }
  0x46   :  { %1012 = dma.done.wait [#allocation8], 4352  }
  0x47   :  { %1013 = vsyncadd [#allocation8], 4294962944 }
  0x48   :  { %1014 = dma.done.wait [#allocation11], 1024  }
  0x49   :  { %1015 = vsyncadd [#allocation11], 4294966272  ;;  %v84_v0 = vld [vmem:[#allocation10 + $0x20] sm:$0xff]  ;;  %v200_v6 = vld [vmem:[#allocation4 + $0x80] sm:$0xff]  ;;  %s1024_s25 = smov [#allocation12]  }
  0x4a   :  { %v1134_v1 = vld [vmem:[#allocation10] sm:$0xff]  ;;  %v104_v2 = vunpack.c.0.s8 %v84_v0  ;;  %v105_v7 = vunpack.c.1.s8 %v84_v0  ;;  %v328_v9 = vld [vmem:[#allocation7 + $0x80] sm:$0xff]  ;;  %v201_v20 = vld [vmem:[#allocation4 + $0x88] sm:$0xff]  ;;  %v107_v21 = vunpack.c.3.s8 %v84_v0  ;;  %v106_v22 = vunpack.c.2.s8 %v84_v0  ;;  %s656_s26 = sshll.u32 %s1024_s25, 4  ;;  %s657_s26 = int_to_ptr.vmem [resolvable:$true] %s656_s26 }
  0x4b   :  { %v88_v3 = vunpack.c.0.s8 %v1134_v1  ;;  %v89_v8 = vunpack.c.1.s8 %v1134_v1  ;;  %v184_v10 = vld [vmem:[#allocation4] sm:$0xff]  ;;  %v706_v14 = vpack.i.bf16 %v328_v9, %v200_v6  ;;  %v329_v23 = vld [vmem:[#allocation7 + $0x88] sm:$0xff]  ;;  %v1154_v30 = vld [vmem:[#allocation10 + $0x28] sm:$0xff]  ;;  %v90_v34 = vunpack.c.2.s8 %v1134_v1  ;;  %s988_s27 = scalar_lea.vmem %s657_s26, 256  ;;  %p993_p5 = scmp.lt.s32.totalorder %s657_s26, %s657_s26 }
  0x4c   :  { %v1137_v4 = vand.u32 255, %v104_v2  ;;  %v312_v11 = vld [vmem:[#allocation7] sm:$0xff]  ;;  %v1144_v16 = vand.u32 255, %v105_v7  ;;  %v185_v24 = vld [vmem:[#allocation4 + $0x8] sm:$0xff]  ;;  %v712_v26 = vpack.i.bf16 %v329_v23, %v201_v20  ;;  %v1150_v28 = vand.u32 255, %v107_v21  ;;  %v203_v33 = vld [vmem:[#allocation4 + $0x98] sm:$0xff]  ;;  %p989_p4 = scmp.ne.s32.totalorder %s657_s26, %s988_s27  ;;  %p994_p6 = scmp.lt.s32.totalorder %s988_s27, %s988_s27 }
  0x4d   :  { %v1139_v5 = vand.u32 255, %v88_v3  ;;  %v718_v15 = vpack.i.bf16 %v312_v11, %v184_v10  ;;  %v1146_v17 = vand.u32 255, %v89_v8  ;;  %v313_v25 = vld [vmem:[#allocation7 + $0x8] sm:$0xff]  ;;  %v1152_v29 = vand.u32 255, %v106_v22  ;;  %v331_v36 = vld [vmem:[#allocation7 + $0x98] sm:$0xff]  ;;  %v202_v37 = vld [vmem:[#allocation4 + $0x90] sm:$0xff] }
  0x4e   :  { %v168_v12 = vand.u32 127, %v1137_v4  ;;  %v169_v18 = vand.u32 127, %v1144_v16  ;;  %v724_v27 = vpack.i.bf16 %v313_v25, %v185_v24  ;;  %v171_v31 = vand.u32 127, %v1150_v28  ;;  %v330_v38 = vld [vmem:[#allocation7 + $0x90] sm:$0xff]  ;;  %v1164_v43 = vld [vmem:[#allocation10 + $0x8] sm:$0xff]  ;;  %v204_v50 = vld [vmem:[#allocation4 + $0xa0] sm:$0xff]  ;;  %p995_p7 = por %p994_p6, %p993_p5 }
  0x4f   :  { %v152_v13 = vand.u32 127, %v1139_v5  ;;  %v153_v19 = vand.u32 127, %v1146_v17  ;;  %v170_v32 = vand.u32 127, %v1152_v29  ;;  %v108_v35 = vunpack.c.0.s8 %v1154_v30  ;;  %v186_v45 = vld [vmem:[#allocation4 + $0x10] sm:$0xff]  ;;  %v332_v51 = vld [vmem:[#allocation7 + $0xa0] sm:$0xff]  ;;  %v187_v57 = vld [vmem:[#allocation4 + $0x18] sm:$0xff] }
  0x50   :  { %705 = vset.pattern.permute.xlu0 %v168_v12  ;;  %v736_v39 = vpack.i.bf16 %v331_v36, %v203_v33  ;;  %v730_v40 = vpack.i.bf16 %v330_v38, %v202_v37  ;;  %v1160_v41 = vand.u32 255, %v90_v34  ;;  %v91_v46 = vunpack.c.3.s8 %v1134_v1  ;;  %v314_v49 = vld [vmem:[#allocation7 + $0x10] sm:$0xff]  ;;  %v315_v61 = vld [vmem:[#allocation7 + $0x18] sm:$0xff]  ;;  %v189_v62 = vld [vmem:[#allocation4 + $0x28] sm:$0xff]  ;;  %p996_p8 = pnand %p995_p7, %p989_p4 }
  0x51   :  { %717 = vset.pattern.permute.xlu1 %v152_v13  ;;  %v1162_v42 = vand.u32 255, %v108_v35  ;;  %v93_v48 = vunpack.c.1.s8 %v1164_v43  ;;  %v742_v52 = vpack.i.bf16 %v314_v49, %v186_v45  ;;  %v754_v54 = vpack.i.bf16 %v332_v51, %v204_v50  ;;  %v317_v63 = vld [vmem:[#allocation7 + $0x28] sm:$0xff]  ;;  %v1182_v6 = vld [vmem:[#allocation10 + $0x30] sm:$0xff]  ;;  %v190_v13 = vld [vmem:[#allocation4 + $0x30] sm:$0xff] }
  0x52   :  { %v154_v44 = vand.u32 127, %v1160_v41  ;;  %v1170_v53 = vand.u32 255, %v91_v46  ;;  %v109_v58 = vunpack.c.1.s8 %v1154_v30  ;;  %v94_v60 = vunpack.c.2.s8 %v1164_v43  ;;  %v205_v8 = vld [vmem:[#allocation4 + $0xa8] sm:$0xff]  ;;  %v188_v22 = vld [vmem:[#allocation4 + $0x20] sm:$0xff]  ;;  %v206_v38 = vld [vmem:[#allocation4 + $0xb0] sm:$0xff] }
  0x53   :  { %v172_v47 = vand.u32 127, %v1162_v42  ;;  %v1172_v55 = vand.u32 255, %v93_v48  ;;  %v748_v0 = vpack.i.bf16 %v315_v61, %v187_v57  ;;  %v772_v2 = vpack.i.bf16 %v317_v63, %v189_v62  ;;  %v333_v12 = vld [vmem:[#allocation7 + $0xa8] sm:$0xff]  ;;  %v1200_v36 = vld [vmem:[#allocation10 + $0x10] sm:$0xff]  ;;  %v334_v45 = vld [vmem:[#allocation7 + $0xb0] sm:$0xff] }
  0x54   :  { %707 = vperm.xlu0 %705, %v706_v14   ;;  %v155_v56 = vand.u32 127, %v1170_v53  ;;  %v1178_v1 = vand.u32 255, %v109_v58  ;;  %v1180_v3 = vand.u32 255, %v94_v60  ;;  %v92_v9 = vunpack.c.0.s8 %v1164_v43  ;;  %v318_v14 = vld [vmem:[#allocation7 + $0x30] sm:$0xff]  ;;  %v195_v60 = vld [vmem:[#allocation4 + $0x58] sm:$0xff] }
  0x55   :  { %719 = vperm.xlu1 %717, %v718_v15   ;;  %v157_v59 = vand.u32 127, %v1172_v55  ;;  %v113_v11 = vunpack.c.1.s8 %v1182_v6  ;;  %v760_v15 = vpack.i.bf16 %v333_v12, %v205_v8  ;;  %v110_v23 = vunpack.c.2.s8 %v1154_v30  ;;  %v210_v46 = vld [vmem:[#allocation4 + $0xd0] sm:$0xff]  ;;  %v323_v61 = vld [vmem:[#allocation7 + $0x58] sm:$0xff] }
  0x56   :  { %v173_v7 = vand.u32 127, %v1178_v1  ;;  %v158_v10 = vand.u32 127, %v1180_v3  ;;  %v114_v25 = vunpack.c.2.s8 %v1182_v6  ;;  %v778_v48 = vpack.i.bf16 %v334_v45, %v206_v38  ;;  %v191_v8 = vld [vmem:[#allocation4 + $0x38] sm:$0xff]  ;;  %v320_v45 = vld [vmem:[#allocation7 + $0x40] sm:$0xff] }
  0x57   :  { %v1190_v20 = vand.u32 255, %v113_v11  ;;  %v1196_v33 = vand.u32 255, %v110_v23  ;;  %v319_v12 = vld [vmem:[#allocation7 + $0x38] sm:$0xff]  ;;  %vm456_vm0 = vcmp.ge.s32.totalorder %v1137_v4, 128  ;;  %vm440_vm1 = vcmp.ge.s32.totalorder %v1139_v5, 128  ;;  %v214_v4 = vld [vmem:[#allocation4 + $0xf0] sm:$0xff] }
  0x58   :  { %711 = vset.pattern.permute.xlu0 %v169_v18  ;;  %v1188_v18 = vand.u32 255, %v92_v9  ;;  %v1198_v35 = vand.u32 255, %v114_v25  ;;  %v112_v9 = vunpack.c.0.s8 %v1182_v6  ;;  %v96_v25 = vunpack.c.0.s8 %v1200_v36 }
  0x59   :  { %723 = vset.pattern.permute.xlu1 %v153_v19  ;;  %v790_v19 = vpack.i.bf16 %v318_v14, %v190_v13  ;;  %v177_v24 = vand.u32 127, %v1190_v20  ;;  %v174_v37 = vand.u32 127, %v1196_v33  ;;  %v196_v13 = vld [vmem:[#allocation4 + $0x60] sm:$0xff]  ;;  %vm457_vm2 = vcmp.ge.s32.totalorder %v1144_v16, 128 }
  0x5a   :  { %v156_v21 = vand.u32 127, %v1188_v18  ;;  %v324_v14 = vld [vmem:[#allocation7 + $0x60] sm:$0xff]  ;;  %vm441_vm3 = vcmp.ge.s32.totalorder %v1146_v17, 128  ;;  %vm458_vm4 = vcmp.ge.s32.totalorder %v1152_v29, 128  ;;  %vm459_vm5 = vcmp.ge.s32.totalorder %v1150_v28, 128  ;;  %v199_v29 = vld [vmem:[#allocation4 + $0x78] sm:$0xff] }
  0x5b   :  { %vm442_vm6 = vcmp.ge.s32.totalorder %v1160_v41, 128  ;;  %vm443_vm7 = vcmp.ge.s32.totalorder %v1170_v53, 128  ;;  %vm460_vm8 = vcmp.ge.s32.totalorder %v1162_v42, 128  ;;  %vm461_vm9 = vcmp.ge.s32.totalorder %v1178_v1, 128 }
  0x5c   :  { %713 = vperm.xlu0 %711, %v712_v26   ;;  %v316_v26 = vld [vmem:[#allocation7 + $0x20] sm:$0xff]  ;;  %vm445_vm10 = vcmp.ge.s32.totalorder %v1172_v55, 128  ;;  %vm444_vm11 = vcmp.ge.s32.totalorder %v1188_v18, 128  ;;  %vm462_vm12 = vcmp.ge.s32.totalorder %v1196_v33, 128  ;;  %vm446_vm14 = vcmp.ge.s32.totalorder %v1180_v3, 128 }
  0x5d   :  { %725 = vperm.xlu1 %723, %v724_v27   ;;  %v209_v27 = vld [vmem:[#allocation4 + $0xc8] sm:$0xff] }
  0x60   :  { %735 = vset.pattern.permute.xlu0 %v171_v31  ;;  %v337_v31 = vld [vmem:[#allocation7 + $0xc8] sm:$0xff] }
  0x61   :  { %729 = vset.pattern.permute.xlu1 %v170_v32  ;;  %v766_v32 = vpack.i.bf16 %v316_v26, %v188_v22  ;;  %v808_v34 = vpack.i.bf16 %v337_v31, %v209_v27  ;;  %v336_v27 = vld [vmem:[#allocation7 + $0xc0] sm:$0xff]  ;;  %v215_v31 = vld [vmem:[#allocation4 + $0xf8] sm:$0xff] }
  0x64   :  { %737 = vperm.xlu0 %735, %v736_v39   ;;  %v111_v39 = vunpack.c.3.s8 %v1154_v30 }
  0x65   :  { %731 = vperm.xlu1 %729, %v730_v40   ;;  %v178_v40 = vand.u32 127, %v1198_v35 }
  0x66   :  { %v1206_v49 = vand.u32 255, %v111_v39 }
  0x68   :  { %753 = vset.pattern.permute.xlu0 %v172_v47  ;;  %v338_v47 = vld [vmem:[#allocation7 + $0xd0] sm:$0xff]  ;;  %v175_v30 = vand.u32 127, %v1206_v49  ;;  %vm463_vm13 = vcmp.ge.s32.totalorder %v1206_v49, 128 }
  0x69   :  { %741 = vset.pattern.permute.xlu1 %v154_v44  ;;  %v99_v44 = vunpack.c.3.s8 %v1200_v36  ;;  %v826_v50 = vpack.i.bf16 %v338_v47, %v210_v46 }
  0x6b   :  { %v1208_v51 = vand.u32 255, %v99_v44  ;;  %v192_v44 = vld [vmem:[#allocation4 + $0x40] sm:$0xff] }
  0x6c   :  { %755 = vperm.xlu0 %753, %v754_v54   ;;  %v207_v54 = vld [vmem:[#allocation4 + $0xb8] sm:$0xff]  ;;  %v814_v46 = vpack.i.bf16 %v320_v45, %v192_v44 }
  0x6d   :  { %743 = vperm.xlu1 %741, %v742_v52   ;;  %v1210_v52 = vld [vmem:[#allocation10 + $0x18] sm:$0xff]  ;;  %v163_v57 = vand.u32 127, %v1208_v51 }
  0x6e   :  { %v100_v58 = vunpack.c.0.s8 %v1210_v52  ;;  %v103_v5 = vunpack.c.3.s8 %v1210_v52 }
  0x70   :  { %771 = vset.pattern.permute.xlu0 %v157_v59  ;;  %v335_v59 = vld [vmem:[#allocation7 + $0xb8] sm:$0xff] }
  0x71   :  { %747 = vset.pattern.permute.xlu1 %v155_v56  ;;  %v95_v56 = vunpack.c.3.s8 %v1164_v43  ;;  %v784_v62 = vpack.i.bf16 %v335_v59, %v207_v54  ;;  %v321_v54 = vld [vmem:[#allocation7 + $0x48] sm:$0xff]  ;;  %v98_v59 = vunpack.c.2.s8 %v1200_v36 }
  0x73   :  { %v1216_v63 = vand.u32 255, %v95_v56 }
  0x74   :  { %773 = vperm.xlu0 %771, %v772_v2   ;;  %v1218_v2 = vand.u32 255, %v100_v58 }
  0x75   :  { %749 = vperm.xlu1 %747, %v748_v0   ;;  %v844_v0 = vpack.i.bf16 %v323_v61, %v195_v60  ;;  %v159_v43 = vand.u32 127, %v1216_v63  ;;  %v211_v60 = vld [vmem:[#allocation4 + $0xd8] sm:$0xff]  ;;  %vm447_vm15 = vcmp.ge.s32.totalorder %v1216_v63, 128 }
  0x76   :  { %v339_v61 = vld [vmem:[#allocation7 + $0xd8] sm:$0xff] }
  0x78   :  { %789 = vset.pattern.permute.xlu0 %v158_v10  ;;  %v164_v10 = vand.u32 127, %v1218_v2 }
  0x79   :  { %759 = vset.pattern.permute.xlu1 %v173_v7  ;;  %v1220_v7 = vld [vmem:[#allocation10 + $0x38] sm:$0xff] }
  0x7a   :  { %v119_v11 = vunpack.c.3.s8 %v1220_v7 }
  0x7c   :  { %791 = vperm.xlu0 %789, %v790_v19   ;;  %v1226_v19 = vand.u32 255, %v112_v9  ;;  %v1228_v22 = vand.u32 255, %v119_v11  ;;  %v322_v9 = vld [vmem:[#allocation7 + $0x50] sm:$0xff] }
  0x7d   :  { %761 = vperm.xlu1 %759, %v760_v15   ;;  %v796_v15 = vpack.i.bf16 %v319_v12, %v191_v8  ;;  %v194_v8 = vld [vmem:[#allocation4 + $0x50] sm:$0xff]  ;;  %v117_v12 = vunpack.c.1.s8 %v1220_v7 }
  0x7e   :  { %v176_v23 = vand.u32 127, %v1226_v19  ;;  %v183_v26 = vand.u32 127, %v1228_v22 }
  0x80   :  { %807 = vset.pattern.permute.xlu0 %v177_v24  ;;  %v208_v24 = vld [vmem:[#allocation4 + $0xc0] sm:$0xff] }
  0x81   :  { %765 = vset.pattern.permute.xlu1 %v156_v21  ;;  %v862_v21 = vpack.i.bf16 %v324_v14, %v196_v13  ;;  %v212_v13 = vld [vmem:[#allocation4 + $0xe0] sm:$0xff] }
  0x82   :  { %v340_v14 = vld [vmem:[#allocation7 + $0xe0] sm:$0xff] }
  0x84   :  { %809 = vperm.xlu0 %807, %v808_v34   ;;  %v802_v34 = vpack.i.bf16 %v336_v27, %v208_v24  ;;  %v101_v24 = vunpack.c.1.s8 %v1210_v52 }
  0x85   :  { %767 = vperm.xlu1 %765, %v766_v32   ;;  %v343_v32 = vld [vmem:[#allocation7 + $0xf8] sm:$0xff] }
  0x86   :  { %v880_v38 = vpack.i.bf16 %v343_v32, %v215_v31  ;;  %v1257_v31 = vand.u32 255, %v101_v24  ;;  %v118_v32 = vunpack.c.2.s8 %v1220_v7 }
  0x88   :  { %825 = vset.pattern.permute.xlu0 %v178_v40  ;;  %v97_v40 = vunpack.c.1.s8 %v1200_v36 }
  0x89   :  { %777 = vset.pattern.permute.xlu1 %v174_v37  ;;  %v1233_v37 = vand.u32 255, %v96_v25  ;;  %v213_v25 = vld [vmem:[#allocation4 + $0xe8] sm:$0xff] }
  0x8a   :  { %v1237_v47 = vand.u32 255, %v97_v40  ;;  %v325_v40 = vld [vmem:[#allocation7 + $0x68] sm:$0xff] }
  0x8b   :  { %v160_v39 = vand.u32 127, %v1233_v37 }
  0x8c   :  { %827 = vperm.xlu0 %825, %v826_v50   ;;  %v115_v50 = vunpack.c.3.s8 %v1182_v6 }
  0x8d   :  { %779 = vperm.xlu1 %777, %v778_v48   ;;  %v161_v48 = vand.u32 127, %v1237_v47 }
  0x90   :  { %843 = vset.pattern.permute.xlu0 %v163_v57  ;;  %v1241_v57 = vand.u32 255, %v115_v50 }
  0x91   :  { %783 = vset.pattern.permute.xlu1 %v175_v30  ;;  %v193_v30 = vld [vmem:[#allocation4 + $0x48] sm:$0xff] }
  0x92   :  { %v820_v56 = vpack.i.bf16 %v321_v54, %v193_v30  ;;  %v179_v58 = vand.u32 127, %v1241_v57 }
  0x94   :  { %845 = vperm.xlu0 %843, %v844_v0   ;;  %v1245_v0 = vand.u32 255, %v98_v59 }
  0x95   :  { %785 = vperm.xlu1 %783, %v784_v62   ;;  %v832_v62 = vpack.i.bf16 %v339_v61, %v211_v60  ;;  %v102_v60 = vunpack.c.2.s8 %v1210_v52  ;;  %v327_v52 = vld [vmem:[#allocation7 + $0x78] sm:$0xff] }
  0x96   :  { %v162_v6 = vand.u32 127, %v1245_v0 }
  0x98   :  { %861 = vset.pattern.permute.xlu0 %v164_v10  ;;  %v838_v10 = vpack.i.bf16 %v322_v9, %v194_v8  ;;  %v342_v8 = vld [vmem:[#allocation7 + $0xf0] sm:$0xff] }
  0x99   :  { %795 = vset.pattern.permute.xlu1 %v159_v43  ;;  %v116_v43 = vunpack.c.0.s8 %v1220_v7  ;;  %v874_v17 = vpack.i.bf16 %v342_v8, %v214_v4  ;;  %v899_v4 = vld [vmem:[#allocation9 + $0x4] ss:$8 sps:$4 sm:$0xff]  }
  0x9a   :  { %601 = vmatprep.mubr.bf16.mxu0 %v899_v4 }
  0x9b   :  { %v1249_v11 = vand.u32 255, %v116_v43 }
  0x9c   :  { %863 = vperm.xlu0 %861, %v862_v21   ;;  %v1253_v21 = vand.u32 255, %v117_v12 }
  0x9d   :  { %797 = vperm.xlu1 %795, %v796_v15   ;;  %v180_v36 = vand.u32 127, %v1249_v11  ;;  %v850_v15 = vpack.i.bf16 %v340_v14, %v212_v13  ;;  %v1271_v13 = vand.u32 255, %v102_v60 }
  0xa0   :  { %879 = vset.pattern.permute.xlu0 %v183_v26  ;;  %v341_v26 = vld [vmem:[#allocation7 + $0xe8] sm:$0xff] }
  0xa1   :  { %801 = vset.pattern.permute.xlu1 %v176_v23  ;;  %v181_v23 = vand.u32 127, %v1253_v21  ;;  %v856_v27 = vpack.i.bf16 %v341_v26, %v213_v25 }
  0xa4   :  { %881 = vperm.xlu0 %879, %v880_v38  }
  0xa5   :  { %803 = vperm.xlu1 %801, %v802_v34   ;;  %v165_v34 = vand.u32 127, %v1257_v31 }
  0xa9   :  { %813 = vset.pattern.permute.xlu1 %v160_v39  ;;  %v197_v39 = vld [vmem:[#allocation4 + $0x68] sm:$0xff] }
  0xaa   :  { %v868_v50 = vpack.i.bf16 %v325_v40, %v197_v39 }
  0xad   :  { %815 = vperm.xlu1 %813, %v814_v46  }
  0xb1   :  { %819 = vset.pattern.permute.xlu1 %v161_v48  ;;  %v1261_v48 = vand.u32 255, %v118_v32  ;;  %v198_v32 = vld [vmem:[#allocation4 + $0x70] sm:$0xff] }
  0xb5   :  { %821 = vperm.xlu1 %819, %v820_v56  }
  0xb9   :  { %831 = vset.pattern.permute.xlu1 %v179_v58  ;;  %v182_v58 = vand.u32 127, %v1261_v48 }
  0xbd   :  { %833 = vperm.xlu1 %831, %v832_v62  }
  0xc1   :  { %837 = vset.pattern.permute.xlu1 %v162_v6 }
  0xc5   :  { %839 = vperm.xlu1 %837, %v838_v10  }
  0xc9   :  { %849 = vset.pattern.permute.xlu1 %v180_v36 }
  0xcd   :  { %851 = vperm.xlu1 %849, %v850_v15  }
  0xd1   :  { %855 = vset.pattern.permute.xlu1 %v181_v23  ;;  %v166_v23 = vand.u32 127, %v1271_v13 }
  0xd3   :  { %v708_v38 = vpop.permute.xlu0 %707 }
  0xd4   :  { %v720_v44 = vpop.permute.xlu1 %719  ;;  %v710_v45 = vunpack.i.h.bf16 %v708_v38  ;;  %v709_v46 = vunpack.i.l.bf16 %v708_v38 }
  0xd5   :  { %857 = vperm.xlu1 %855, %v856_v27   ;;  %v722_v30 = vunpack.i.h.bf16 %v720_v44  ;;  %v721_v54 = vunpack.i.l.bf16 %v720_v44 }
  0xd6   :  { %v488_v59 = vsel %vm456_vm0, %v710_v45, %v709_v46  ;;  %v1277_v45 = vand.u32 255, %v103_v5  ;;  %vm465_vm0 = vcmp.ge.s32.totalorder %v1190_v20, 128 }
  0xd7   :  { %v472_v16 = vsel %vm440_vm1, %v722_v30, %v721_v54  ;;  %vm464_vm1 = vcmp.ge.s32.totalorder %v1226_v19, 128 }
  0xd8   :  { %v167_v28 = vand.u32 127, %v1277_v45 }
  0xd9   :  { %867 = vset.pattern.permute.xlu1 %v165_v34  ;;  %v326_v34 = vld [vmem:[#allocation7 + $0x70] sm:$0xff] }
  0xda   :  { %v886_v44 = vpack.i.bf16 %v326_v34, %v198_v32 }
  0xdb   :  { %v714_v7 = vpop.permute.xlu0 %713 }
  0xdc   :  { %v726_v56 = vpop.permute.xlu1 %725  ;;  %v716_v61 = vunpack.i.h.bf16 %v714_v7  ;;  %v715_v62 = vunpack.i.l.bf16 %v714_v7 }
  0xdd   :  { %v728_v6 = vunpack.i.h.bf16 %v726_v56  ;;  %v727_v43 = vunpack.i.l.bf16 %v726_v56  ;;  %869 = vperm.xlu1 %867, %v868_v50   ;;  %v892_v50 = vpack.i.bf16 %v327_v52, %v199_v29 }
  0xde   :  { %v489_v9 = vsel %vm457_vm2, %v716_v61, %v715_v62  ;;  %vm448_vm2 = vcmp.ge.s32.totalorder %v1233_v37, 128 }
  0xdf   :  { %v473_v10 = vsel %vm441_vm3, %v728_v6, %v727_v43  ;;  %v512_v36 = vpack.c.bf16 %v489_v9, %v488_v59  ;;  %vm449_vm3 = vcmp.ge.s32.totalorder %v1237_v47, 128 }
  0xe0   :  { %v504_v12 = vpack.c.bf16 %v473_v10, %v472_v16 }
  0xe1   :  { %873 = vset.pattern.permute.xlu1 %v182_v58  ;;  %676 = vmatprep.subr.bf16.mxu0 %v512_v36 }
  0xe2   :  { %677 = vmatpush3.bf16.msra.mxu0 %v504_v12 }
  0xe3   :  { %v738_v14 = vpop.permute.xlu0 %737 }
  0xe4   :  { %v732_v15 = vpop.permute.xlu1 %731  ;;  %v740_v24 = vunpack.i.h.bf16 %v738_v14  ;;  %v739_v25 = vunpack.i.l.bf16 %v738_v14 }
  0xe5   :  { %v734_v26 = vunpack.i.h.bf16 %v732_v15  ;;  %v733_v27 = vunpack.i.l.bf16 %v732_v15  ;;  %875 = vperm.xlu1 %873, %v874_v17  }
  0xe6   :  { %v491_v39 = vsel %vm459_vm5, %v740_v24, %v739_v25  ;;  %vm467_vm5 = vcmp.ge.s32.totalorder %v1241_v57, 128 }
  0xe7   :  { %v490_v38 = vsel %vm458_vm4, %v734_v26, %v733_v27  ;;  %vm466_vm4 = vcmp.ge.s32.totalorder %v1198_v35, 128 }
  0xe8   :  { %v513_v40 = vpack.c.bf16 %v491_v39, %v490_v38 }
  0xe9   :  { %885 = vset.pattern.permute.xlu1 %v166_v23 }
  0xea   :  { %678 = vmatprep.subr.bf16.mxu0 %v513_v40 }
  0xeb   :  { %v756_v59 = vpop.permute.xlu0 %755 }
  0xec   :  { %v744_v46 = vpop.permute.xlu1 %743  ;;  %v758_v6 = vunpack.i.h.bf16 %v756_v59  ;;  %v757_v43 = vunpack.i.l.bf16 %v756_v59 }
  0xed   :  { %887 = vperm.xlu1 %885, %v886_v44   ;;  %v746_v30 = vunpack.i.h.bf16 %v744_v46  ;;  %v745_v54 = vunpack.i.l.bf16 %v744_v46 }
  0xee   :  { %v492_v53 = vsel %vm460_vm8, %v758_v6, %v757_v43  ;;  %vm468_vm8 = vcmp.ge.s32.totalorder %v1249_v11, 128 }
  0xef   :  { %v474_v60 = vsel %vm442_vm6, %v746_v30, %v745_v54  ;;  %vm451_vm6 = vcmp.ge.s32.totalorder %v1208_v51, 128 }
  0xf1   :  { %891 = vset.pattern.permute.xlu1 %v167_v28 }
  0xf3   :  { %v774_v16 = vpop.permute.xlu0 %773 }
  0xf4   :  { %v750_v7 = vpop.permute.xlu1 %749  ;;  %v776_v12 = vunpack.i.h.bf16 %v774_v16  ;;  %v775_v17 = vunpack.i.l.bf16 %v774_v16 }
  0xf5   :  { %v752_v56 = vunpack.i.h.bf16 %v750_v7  ;;  %v751_v58 = vunpack.i.l.bf16 %v750_v7  ;;  %893 = vperm.xlu1 %891, %v892_v50  }
  0xf6   :  { %v477_v23 = vsel %vm445_vm10, %v776_v12, %v775_v17  ;;  %vm452_vm10 = vcmp.ge.s32.totalorder %v1218_v2, 128 }
  0xf7   :  { %v475_v61 = vsel %vm443_vm7, %v752_v56, %v751_v58  ;;  %vm450_vm7 = vcmp.ge.s32.totalorder %v1245_v0, 128 }
  0xf8   :  { %v505_v62 = vpack.c.bf16 %v475_v61, %v474_v60 }
  0xfa   :  { %679 = vmatpush3.bf16.msra.mxu0 %v505_v62 }
  0xfb   :  { %v792_v55 = vpop.permute.xlu0 %791 }
  0xfc   :  { %v762_v8 = vpop.permute.xlu1 %761  ;;  %v794_v40 = vunpack.i.h.bf16 %v792_v55  ;;  %v793_v44 = vunpack.i.l.bf16 %v792_v55 }
  0xfd   :  { %v764_v41 = vunpack.i.h.bf16 %v762_v8  ;;  %v763_v9 = vunpack.i.l.bf16 %v762_v8 }
  0xfe   :  { %v478_v46 = vsel %vm446_vm14, %v794_v40, %v793_v44  ;;  %vm454_vm14 = vcmp.ge.s32.totalorder %v1271_v13, 128  ;;  %v675_v13 = vld [vmem:[%s1332_s5] ss:$0 sm:$0xff] }
  0xff   :  { %v493_v10 = vsel %vm461_vm9, %v764_v41, %v763_v9  ;;  %vm469_vm9 = vcmp.ge.s32.totalorder %v1253_v21, 128 }
 0x100   :  { %v514_v36 = vpack.c.bf16 %v493_v10, %v492_v53 }
 0x102   :  { %680 = vmatprep.subr.bf16.mxu0 %v514_v36 }
 0x103   :  { %v810_v33 = vpop.permute.xlu0 %809 }
 0x104   :  { %v768_v14 = vpop.permute.xlu1 %767  ;;  %v812_v30 = vunpack.i.h.bf16 %v810_v33  ;;  %v811_v54 = vunpack.i.l.bf16 %v810_v33 }
 0x105   :  { %v770_v42 = vunpack.i.h.bf16 %v768_v14  ;;  %v769_v15 = vunpack.i.l.bf16 %v768_v14 }
 0x106   :  { %v497_v3 = vsel %vm465_vm0, %v812_v30, %v811_v54 }
 0x107   :  { %v476_v5 = vsel %vm444_vm11, %v770_v42, %v769_v15  ;;  %vm453_vm11 = vcmp.ge.s32.totalorder %v1257_v31, 128 }
 0x108   :  { %v506_v1 = vpack.c.bf16 %v477_v23, %v476_v5 }
 0x10a   :  { %681 = vmatpush3.bf16.msra.mxu0 %v506_v1 }
 0x10b   :  { %v828_v20 = vpop.permute.xlu0 %827 }
 0x10c   :  { %v780_v24 = vpop.permute.xlu1 %779  ;;  %v830_v9 = vunpack.i.h.bf16 %v828_v20  ;;  %v829_v53 = vunpack.i.l.bf16 %v828_v20 }
 0x10d   :  { %v782_v25 = vunpack.i.h.bf16 %v780_v24  ;;  %v781_v26 = vunpack.i.l.bf16 %v780_v24 }
 0x10e   :  { %v498_v12 = vsel %vm466_vm4, %v830_v9, %v829_v53 }
 0x10f   :  { %v494_v38 = vsel %vm462_vm12, %v782_v25, %v781_v26  ;;  %vm471_vm12 = vcmp.ge.s32.totalorder %v1228_v22, 128 }
 0x113   :  { %v846_v37 = vpop.permute.xlu0 %845 }
 0x114   :  { %v786_v27 = vpop.permute.xlu1 %785  ;;  %v848_v14 = vunpack.i.h.bf16 %v846_v37  ;;  %v847_v42 = vunpack.i.l.bf16 %v846_v37 }
 0x115   :  { %v788_v32 = vunpack.i.h.bf16 %v786_v27  ;;  %v787_v34 = vunpack.i.l.bf16 %v786_v27 }
 0x116   :  { %v483_v35 = vsel %vm451_vm6, %v848_v14, %v847_v42 }
 0x117   :  { %v495_v39 = vsel %vm463_vm13, %v788_v32, %v787_v34  ;;  %vm470_vm13 = vcmp.ge.s32.totalorder %v1261_v48, 128  ;;  %v897_v48 = vld [vmem:[#allocation9] ss:$8 sps:$4 sm:$0xff]  }
 0x118   :  { %v515_v18 = vpack.c.bf16 %v495_v39, %v494_v38 }
 0x11a   :  { %682 = vmatprep.subr.bf16.mxu0 %v515_v18 }
 0x11b   :  { %v864_v51 = vpop.permute.xlu0 %863 }
 0x11c   :  { %v798_v28 = vpop.permute.xlu1 %797  ;;  %v866_v39 = vunpack.i.h.bf16 %v864_v51  ;;  %v865_v18 = vunpack.i.l.bf16 %v864_v51 }
 0x11d   :  { %v800_v29 = vunpack.i.h.bf16 %v798_v28  ;;  %v799_v52 = vunpack.i.l.bf16 %v798_v28 }
 0x11f   :  { %v479_v50 = vsel %vm447_vm15, %v800_v29, %v799_v52  ;;  %v484_v29 = vsel %vm452_vm10, %v866_v39, %v865_v18  ;;  %vm455_vm15 = vcmp.ge.s32.totalorder %v1277_v45, 128 }
 0x120   :  { %v507_v49 = vpack.c.bf16 %v479_v50, %v478_v46 }
 0x122   :  { %683 = vmatpush3.bf16.msra.mxu0 %v507_v49 }
 0x123   :  { %v882_v11 = vpop.permute.xlu0 %881 }
 0x124   :  { %v804_v7 = vpop.permute.xlu1 %803  ;;  %v884_v46 = vunpack.i.h.bf16 %v882_v11  ;;  %v883_v33 = vunpack.i.l.bf16 %v882_v11 }
 0x125   :  { %v806_v56 = vunpack.i.h.bf16 %v804_v7  ;;  %v805_v58 = vunpack.i.l.bf16 %v804_v7 }
 0x126   :  { %v503_v2 = vsel %vm471_vm12, %v884_v46, %v883_v33 }
 0x127   :  { %v496_v59 = vsel %vm464_vm1, %v806_v56, %v805_v58 }
 0x128   :  { %v516_v60 = vpack.c.bf16 %v497_v3, %v496_v59 }
 0x12a   :  { %684 = vmatprep.subr.bf16.mxu0 %v516_v60 }
 0x12c   :  { %v816_v63 = vpop.permute.xlu1 %815 }
 0x12d   :  { %v818_v61 = vunpack.i.h.bf16 %v816_v63  ;;  %v817_v62 = vunpack.i.l.bf16 %v816_v63 }
 0x12f   :  { %v480_v8 = vsel %vm448_vm2, %v818_v61, %v817_v62 }
 0x134   :  { %v822_v6 = vpop.permute.xlu1 %821 }
 0x135   :  { %v824_v43 = vunpack.i.h.bf16 %v822_v6  ;;  %v823_v4 = vunpack.i.l.bf16 %v822_v6 }
 0x137   :  { %v481_v41 = vsel %vm449_vm3, %v824_v43, %v823_v4  ;;  %v674_v43 = vld [vmem:[%s1331_s4] ss:$0 sm:$0xff] }
 0x138   :  { %v508_v19 = vpack.c.bf16 %v481_v41, %v480_v8 }
 0x13a   :  { %685 = vmatpush3.bf16.msra.mxu0 %v508_v19 }
 0x13c   :  { %v834_v16 = vpop.permute.xlu1 %833 }
 0x13d   :  { %v836_v10 = vunpack.i.h.bf16 %v834_v16  ;;  %v835_v36 = vunpack.i.l.bf16 %v834_v16 }
 0x13f   :  { %v499_v17 = vsel %vm467_vm5, %v836_v10, %v835_v36 }
 0x140   :  { %v517_v47 = vpack.c.bf16 %v499_v17, %v498_v12 }
 0x142   :  { %686 = vmatprep.subr.bf16.mxu0 %v517_v47 }
 0x144   :  { %v840_v15 = vpop.permute.xlu1 %839 }
 0x145   :  { %v842_v23 = vunpack.i.h.bf16 %v840_v15  ;;  %v841_v5 = vunpack.i.l.bf16 %v840_v15 }
 0x147   :  { %v482_v1 = vsel %vm450_vm7, %v842_v23, %v841_v5 }
 0x148   :  { %v509_v24 = vpack.c.bf16 %v483_v35, %v482_v1 }
 0x14a   :  { %687 = vmatpush3.bf16.msra.mxu0 %v509_v24 }
 0x14c   :  { %v852_v57 = vpop.permute.xlu1 %851 }
 0x14d   :  { %v854_v25 = vunpack.i.h.bf16 %v852_v57  ;;  %v853_v26 = vunpack.i.l.bf16 %v852_v57 }
 0x14f   :  { %v500_v55 = vsel %vm468_vm8, %v854_v25, %v853_v26 }
 0x154   :  { %v858_v27 = vpop.permute.xlu1 %857 }
 0x155   :  { %v860_v32 = vunpack.i.h.bf16 %v858_v27  ;;  %v859_v34 = vunpack.i.l.bf16 %v858_v27 }
 0x157   :  { %v501_v38 = vsel %vm469_vm9, %v860_v32, %v859_v34 }
 0x158   :  { %v518_v0 = vpack.c.bf16 %v501_v38, %v500_v55 }
 0x15a   :  { %688 = vmatprep.subr.bf16.mxu0 %v518_v0 }
 0x15c   :  { %v870_v40 = vpop.permute.xlu1 %869 }
 0x15d   :  { %v872_v44 = vunpack.i.h.bf16 %v870_v40  ;;  %v871_v28 = vunpack.i.l.bf16 %v870_v40 }
 0x15f   :  { %v485_v52 = vsel %vm453_vm11, %v872_v44, %v871_v28 }
 0x160   :  { %v510_v21 = vpack.c.bf16 %v485_v52, %v484_v29 }
 0x162   :  { %689 = vmatpush3.bf16.msra.mxu0 %v510_v21 }
 0x164   :  { %v876_v50 = vpop.permute.xlu1 %875 }
 0x165   :  { %v878_v49 = vunpack.i.h.bf16 %v876_v50  ;;  %v877_v30 = vunpack.i.l.bf16 %v876_v50 }
 0x167   :  { %v502_v54 = vsel %vm470_vm13, %v878_v49, %v877_v30 }
 0x168   :  { %v519_v7 = vpack.c.bf16 %v503_v2, %v502_v54 }
 0x16a   :  { %690 = vmatprep.subr.bf16.mxu0 %v519_v7 }
 0x16c   :  { %v888_v31 = vpop.permute.xlu1 %887 }
 0x16d   :  { %v890_v56 = vunpack.i.h.bf16 %v888_v31  ;;  %v889_v58 = vunpack.i.l.bf16 %v888_v31 }
 0x16f   :  { %v486_v22 = vsel %vm454_vm14, %v890_v56, %v889_v58 }
 0x174   :  { %v894_v3 = vpop.permute.xlu1 %893 }
 0x175   :  { %v896_v59 = vunpack.i.h.bf16 %v894_v3  ;;  %v895_v60 = vunpack.i.l.bf16 %v894_v3 }
 0x177   :  { %v487_v63 = vsel %vm455_vm15, %v896_v59, %v895_v60 }
 0x178   :  { %v511_v61 = vpack.c.bf16 %v487_v63, %v486_v22 }
 0x17a   :  { %691 = vmatpush3.bf16.msra.mxu0 %v511_v61 }
 0x17d   :  { %602 = vmatmul.mubr.bf16.vlgmr.msra.gmra.mrb[0].mxu0 %v897_v48 }
 0x250   :  { %v692_v62 = vpop.f32.mrb[0].mxu0 }
 0x251   :  { %v693_v6 = vpop.f32.mrb[1].mxu0 }
 0x252   :  { %v694_v4 = vadd.f32 %v693_v6, %v692_v62  ;;  %v695_v20 = vpop.f32.mrb[2].mxu0 }
 0x253   :  { %v696_v45 = vpop.f32.mrb[3].mxu0 }
 0x254   :  { %v638_v8 = vmul.f32 %v694_v4, %v674_v43  ;;  %v697_v41 = vadd.f32 %v696_v45, %v695_v20 }
 0x256   :  { %v647_v19 = vadd.f32 %v675_v13, %v638_v8  ;;  %v639_v9 = vmul.f32 %v697_v41, %v674_v43 }
 0x258   :  { %649 = vst [vmem:[#allocation12] sm:$0xff] %v647_v19  ;;  %v648_v53 = vadd.f32 %v675_v13, %v639_v9 }
 0x25a   :  { %650 = vst [vmem:[#allocation12 + $0x8] sm:$0xff] %v648_v53 }
 0x25b   :  { %999 = shalt.err (!%p996_p8)
}
 0x25c   :  { %s1000_s28 = scalar_lea.hbm %s1333_s6, 256 }
 0x25d   :  { %p1001_p9 = scmp.ne.s32.totalorder %s1333_s6, %s1000_s28  ;;  %p1004_p10 = scmp.lt.u32.totalorder %s1000_s28, %s1333_s6 }
 0x25f   :  { %p1006_p11 = pnand %p1004_p10, %p1001_p9 }
 0x261   :  { %1009 = shalt.err (!%p1006_p11)
}
 0x262   :  { %662 = dma.vmem_to_hbm [thread:$0]  %s657_s26, 256, %s1333_s6, [#allocation6], %s1020_s9, %s1020_s9, %s1021_s10  }
 0x263   :  { %1016 = dma.done.wait [#allocation6], 256  }
 0x264   :  { %1017 = vsyncadd [#allocation6], 4294967040 }
 0x265   :  { %666 = vsyncpa [#allocation5], 1 }
 0x266   :  { %667 = vsyncpa [#allocation8], 1 }
 0x267   :  { %668 = vsyncpa [#allocation11], 1 }
 0x268   :  { %669 = vsyncpa [#allocation6], 1 }

</bundles_post_ra>
